<compile_context>
chip_gen: v5e
topology: v5e:2x2
jax: 0.10.0
libtpu: 0.0.40
codegen_flags: <defaults>
</compile_context>

<pallas_src>
import jax
import jax.numpy as jnp
from jax.experimental import pallas as pl
from jax.experimental.pallas import tpu as pltpu

EPS = 1e-10


def l1norm_kernel(x_ref, o_ref):
    # x_ref / o_ref: (TN, D) tile in VMEM.
    xf = x_ref[...].astype(jnp.float32)
    # Per-row L1 norm, accumulated in f32.
    norm = jnp.sum(jnp.abs(xf), axis=1, keepdims=True) + EPS
    # Exact per-row reciprocal (tiny: TN/8 vregs) — hidden under the tile DMA.
    inv = pl.reciprocal(norm, approx=False)
    # Multiply in f32, single cast at the store.
    o_ref[...] = (xf * inv).astype(o_ref.dtype)


def _round_up(v, m):
    return int(pl.cdiv(v, m) * m)


def l1norm(x, *, tile_rows=None):
    N, D = x.shape
    itemsize = jnp.dtype(x.dtype).itemsize
    # Sublane packing multiple: 8 rows for f32, 16 for bf16, 32 for int8/fp8.
    row_align = max(8, 32 // itemsize)

    # VMEM-aware block sizing.
    try:
        vmem_bytes = pltpu.get_tpu_info().vmem_capacity_bytes
    except Exception:  # e.g. interpret mode / unknown chip
        vmem_bytes = 64 * 1024 * 1024
    if vmem_bytes >= 100 * 1024 * 1024:
        # v5e / v6e: 128 MiB physical VMEM -> bigger blocks, fewer steps.
        target_block_bytes = 8 * 1024 * 1024
        vmem_limit = 64 * 1024 * 1024
    else:
        # v7x: 64 MiB physical VMEM -> keep blocks ~4 MiB, 32 MiB scoped.
        target_block_bytes = 4 * 1024 * 1024
        vmem_limit = 32 * 1024 * 1024

    bytes_per_row = D * itemsize
    total_bytes = N * bytes_per_row

    if tile_rows is None:
        if total_bytes <= target_block_bytes:
            # Single-block fast path: one grid step, block = full array dims.
            tile_rows = N
        else:
            tile_rows = max(row_align, target_block_bytes // bytes_per_row)
            tile_rows = _round_up(tile_rows, row_align)
            grid_n = pl.cdiv(N, tile_rows)
            # Balance small odd grids across v7x's 2 TensorCores.
            if 1 < grid_n <= 8 and grid_n % 2 == 1:
                grid_n += 1
                tile_rows = _round_up(pl.cdiv(N, grid_n), row_align)
    # Never exceed N rows; if clamped to N the block equals the full dim,
    # which satisfies the (8,128) block-shape rule.
    tile_rows = min(int(tile_rows), N)

    grid_n = pl.cdiv(N, tile_rows)

    cost = pl.CostEstimate(
        flops=3 * N * D,            # abs + mul + reduce-add
        transcendentals=N,          # one reciprocal per row
        bytes_accessed=2 * N * D * itemsize,
    )

    return pl.pallas_call(
        l1norm_kernel,
        out_shape=jax.ShapeDtypeStruct((N, D), x.dtype),
        grid_spec=pl.GridSpec(
            grid=(grid_n,),
            in_specs=[pl.BlockSpec((tile_rows, D), lambda i: (i, 0))],
            out_specs=pl.BlockSpec((tile_rows, D), lambda i: (i, 0)),
        ),
        compiler_params=pltpu.CompilerParams(
            dimension_semantics=("parallel",),
            vmem_limit_bytes=vmem_limit,
        ),
        cost_estimate=cost,
    )(x)


if __name__ == "__main__":
    key = jax.random.PRNGKey(0)
    # Small descriptor batch: batch=12 (exercises the single-block fast path
    # with a non-multiple-of-8 row count), feature dim=128 (HardNet width).
    x = jax.random.normal(key, (12, 128), dtype=jnp.float32)

    out = l1norm(x)
    out = jax.block_until_ready(out)

    # Reference check in plain JAX.
    ref = x / (jnp.sum(jnp.abs(x), axis=1, keepdims=True) + EPS)
    assert out.shape == ref.shape
    assert jnp.allclose(out, ref, rtol=1e-5, atol=1e-6)

    print("KERNEL_OK")
</pallas_src>

<mosaic_0001>
module attributes {stable_mosaic.version = 11 : i64} {
  func.func @l1norm_kernel(%arg0: i32, %arg1: memref<12x128xf32, #tpu.memory_space<vmem>>, %arg2: memref<12x128xf32, #tpu.memory_space<vmem>>) attributes {dimension_semantics = [#tpu.dimension_semantics<parallel>], iteration_bounds = array<i64: 1>, scalar_prefetch = 0 : i64, scratch_operands = 0 : i64, tpu.core_type = #tpu.core_type<tc>, window_params = [{transform_indices = @transform_0, window_bounds = array<i64: 12, 128>}, {transform_indices = @transform_1, window_bounds = array<i64: 12, 128>}]} {
    %c0 = arith.constant 0 : index
    %c0_0 = arith.constant 0 : index
    %0 = vector.load %arg1[%c0, %c0_0] : memref<12x128xf32, #tpu.memory_space<vmem>>, vector<12x128xf32>
    %1 = math.absf %0 : vector<12x128xf32>
    %cst = arith.constant dense<0.000000e+00> : vector<12xf32>
    %2 = vector.multi_reduction <add>, %1, %cst [1] : vector<12x128xf32> to vector<12xf32>
    %3 = vector.shape_cast %2 : vector<12xf32> to vector<12x1xf32>
    %cst_1 = arith.constant 1.000000e-10 : f32
    %4 = vector.broadcast %cst_1 : f32 to vector<12x1xf32>
    %5 = arith.addf %3, %4 : vector<12x1xf32>
    %6 = tpu.reciprocal %5 : vector<12x1xf32> -> vector<12x1xf32>
    %7 = vector.broadcast %6 : vector<12x1xf32> to vector<12x128xf32>
    %8 = arith.mulf %0, %7 : vector<12x128xf32>
    %c0_2 = arith.constant 0 : index
    %c0_3 = arith.constant 0 : index
    %9 = vector.load %arg2[%c0_2, %c0_3] : memref<12x128xf32, #tpu.memory_space<vmem>>, vector<12x128xf32>
    tpu.vector_store %arg2[%c0_2, %c0_3], %8 {strides = array<i32>} : memref<12x128xf32, #tpu.memory_space<vmem>>, vector<12x128xf32>,
    return
  }
  func.func @transform_0(%arg0: i32) -> (i32, i32) {
    %c0_i32 = arith.constant 0 : i32
    %c0_i32_0 = arith.constant 0 : i32
    return %arg0, %c0_i32 : i32, i32
  }
  func.func @transform_1(%arg0: i32) -> (i32, i32) {
    %c0_i32 = arith.constant 0 : i32
    %c0_i32_0 = arith.constant 0 : i32
    return %arg0, %c0_i32 : i32, i32
  }
}

</mosaic_0001>

<bundles_post_ra>
// kernel: tpu_custom_call.1
= control target key start
LH: loop header
LB: loop body
LE: loop exit
PB: predicated region body
PF: predicated region fallthrough
CT: control target
= control target key end

     0   :  { %6 = vsyncpa [#allocation3], 0  ;;  %s174_s0 = inlined_call_operand.hbm [shape: f32[12,128], index: 0, kind: input, shape index: {}]   ;;  %s175_s1 = inlined_call_operand.hbm [shape: f32[12,128], index: 1, kind: output, shape index: {}]  }
   0x1   :  { %7 = vsyncpa [#allocation4], 0  ;;  %s12_s8 = sshll.u32 %s174_s0, 4  ;;  %s148_s9 = smov [#allocation2]   ;;  %s13_s8 = int_to_ptr.hbm [resolvable:$true] %s12_s8 }
   0x2   :  { %s14_s10 = sshll.u32 %s148_s9, 4  ;;  %s149_s11 = smov 128   ;;  %s15_s10 = int_to_ptr.vmem [resolvable:$true] %s14_s10 }
   0x3   :  { %s150_s12 = smov 8  }
   0x4   :  { %20 = dma.hbm_to_vmem [thread:$0]  %s13_s8, 256, %s15_s10, [#allocation3], %s149_s11, %s149_s11, %s150_s12  }
   0x5   :  { %144 = dma.done.wait [#allocation3], 256  }
   0x6   :  { %145 = vsyncadd [#allocation3], 4294967040  ;;  %v25_v0 = vld [vmem:[#allocation2] sm:$0xff]  ;;  %v26_v2 = vld [vmem:[#allocation2 + $0x8] sm:$0xf]  ;;  %vm31_vm0 = vcmask 1043456  }
   0x7   :  { %v27_v1 = vand.u32 2147483647, %v25_v0  ;;  %v28_v3 = vand.u32 2147483647, %v26_v2  ;;  %s151_s0 = smov [#allocation5]   ;;  %s75_s16 = sshll.u32 %s175_s1, 4  ;;  %s76_s16 = int_to_ptr.hbm [resolvable:$true] %s75_s16 }
   0x8   :  { %s73_s13 = sshll.u32 %s151_s0, 4  ;;  %s74_s13 = int_to_ptr.vmem [resolvable:$true] %s73_s13 }
   0x9   :  { %29 = vadd.xlane.f32.xlu0 %v27_v1  ;;  %v32_v4 = vsel %vm31_vm0, %v28_v3, 0.0 }
  0x11   :  { %33 = vadd.xlane.f32.xlu0 %v32_v4 }
  0x7c   :  { %v30_v5 = vpop.xlane.xlu0 %29 }
  0x7d   :  { %v35_v6 = vadd.f32 1e-10, %v30_v5 }
  0x7f   :  { %92 = vrcp.f32 %v35_v6  ;;  %v48_v12 = vand.u32 2147483648, %v35_v6  ;;  %v46_v14 = vand.u32 2147483647, %v35_v6  ;;  %vm42_vm2 = vweird.f32 %v35_v6 }
  0x81   :  { %v49_v17 = vor.u32 1.1754944e-38, %v48_v12  ;;  %vm47_vm4 = vcmp.eq.f32.partialorder %v46_v14, 8.507059e+37 }
  0x84   :  { %v34_v7 = vpop.xlane.xlu0 %33 }
  0x85   :  { %v93_v8 = vpop.eup %92  ;;  %v36_v9 = vadd.f32 1e-10, %v34_v7 }
  0x86   :  { %v38_v10 = vmul.f32 %v93_v8, %v35_v6  ;;  %vm43_vm1 = vweird.f32 %v93_v8 }
  0x87   :  { %94 = vrcp.f32 %v36_v9  ;;  %vm44_vm3 = vmor %vm42_vm2, %vm43_vm1  ;;  %v62_v23 = vand.u32 2147483648, %v36_v9  ;;  %v60_v25 = vand.u32 2147483647, %v36_v9  ;;  %vm56_vm6 = vweird.f32 %v36_v9 }
  0x88   :  { %v39_v11 = vsub.f32 1.0, %v38_v10 }
  0x89   :  { %v63_v27 = vor.u32 1.1754944e-38, %v62_v23  ;;  %vm61_vm8 = vcmp.eq.f32.partialorder %v60_v25, 8.507059e+37 }
  0x8a   :  { %v40_v13 = vmul.f32 %v93_v8, %v39_v11 }
  0x8c   :  { %v41_v15 = vadd.f32 %v93_v8, %v40_v13 }
  0x8d   :  { %v95_v16 = vpop.eup %94 }
  0x8e   :  { %v52_v18 = vmul.f32 %v95_v16, %v36_v9  ;;  %v45_v19 = vsel %vm44_vm3, %v93_v8, %v41_v15  ;;  %vm57_vm5 = vweird.f32 %v95_v16 }
  0x8f   :  { %v50_v20 = vsel %vm47_vm4, %v49_v17, %v45_v19  ;;  %vm58_vm7 = vmor %vm56_vm6, %vm57_vm5 }
  0x90   :  { %v53_v21 = vsub.f32 1.0, %v52_v18  ;;  %v65_v22 = vmul.f32 %v50_v20, %v25_v0 }
  0x92   :  { %v54_v24 = vmul.f32 %v95_v16, %v53_v21  ;;  %67 = vst [vmem:[#allocation5] sm:$0xff] %v65_v22 }
  0x94   :  { %v55_v26 = vadd.f32 %v95_v16, %v54_v24 }
  0x96   :  { %v59_v28 = vsel %vm58_vm7, %v95_v16, %v55_v26 }
  0x97   :  { %v64_v29 = vsel %vm61_vm8, %v63_v27, %v59_v28 }
  0x98   :  { %v66_v30 = vmul.f32 %v64_v29, %v26_v2 }
  0x9a   :  { %68 = vst [vmem:[#allocation5 + $0x8] sm:$0xf] %v66_v30 }
  0x9b   :  { %81 = dma.vmem_to_hbm [thread:$0]  %s74_s13, 256, %s76_s16, [#allocation4], %s149_s11, %s149_s11, %s150_s12  }
  0x9c   :  { %146 = dma.done.wait [#allocation4], 256  }
  0x9d   :  { %147 = vsyncadd [#allocation4], 4294967040 }
  0x9e   :  { %86 = vsyncpa [#allocation3], 1 }
  0x9f   :  { %87 = vsyncpa [#allocation4], 1 }

</bundles_post_ra>
